<compile_context>
chip_gen: v7x
topology: tpu7x:2x2x1
jax: 0.10.0
libtpu: 0.0.40
codegen_flags: <defaults>
</compile_context>

<pallas_src>
import jax
import jax.numpy as jnp
from jax import lax
from jax.experimental import pallas as pl


def conv1x1_kernel(x_ref, w_ref, o_ref):
    # x_ref: [M, C_in] bf16, w_ref: [C_out, C_in] bf16 -> o_ref: [M, C_out] f32.
    # Contract C_in (the lane dim of BOTH operands); single MXU matmul with
    # f32 accumulation.  The f32 output block in VMEM is the accumulator.
    o_ref[...] = lax.dot_general(
        x_ref[...],
        w_ref[...],
        dimension_numbers=(((1,), (1,)), ((), ())),
        preferred_element_type=jnp.float32,
    ).astype(o_ref.dtype)


def conv2d_1x1(x_nchw, weight_oi11):
    """1x1 conv, stride 1, no bias.

    x_nchw:      [N, C_in, H, W]   (N == 1, the module's shape)
    weight_oi11: [C_out, C_in, 1, 1]
    returns:     [N, C_out, H, W]  float32
    """
    N, C_in, H, W = x_nchw.shape
    C_out = weight_oi11.shape[0]
    assert weight_oi11.shape == (C_out, C_in, 1, 1)
    assert N == 1, "fast path is specialized for N == 1 (the module's shape)"

    M = N * H * W

    # Wrapper-side layout prep (outside the kernel, fused by XLA):
    #   NCHW (N==1) -> [C_in, M] (free reshape) -> [M, C_in] (326 KB transpose)
    #   [C_out, C_in, 1, 1] -> [C_out, C_in]     (free reshape)
    # Both operands are carried into the kernel as bf16; C_in is the last
    # (lane) dim of both, C_out=128 is the output's lane dim.
    x_t = x_nchw.reshape(C_in, M).T.astype(jnp.bfloat16)        # [M, C_in]
    w_mat = weight_oi11.reshape(C_out, C_in).astype(jnp.bfloat16)  # [C_out, C_in]

    cost = pl.CostEstimate(
        flops=2 * M * C_in * C_out,
        transcendentals=0,
        bytes_accessed=(x_t.size * 2 + w_mat.size * 2 + M * C_out * 4),
    )

    # No grid: whole-array VMEM blocks (~0.6 MB total), one kernel invocation,
    # one uninterrupted K = C_in accumulation chain on the MXU.
    out_mc = pl.pallas_call(
        conv1x1_kernel,
        out_shape=jax.ShapeDtypeStruct((M, C_out), jnp.float32),
        cost_estimate=cost,
    )(x_t, w_mat)

    # [M, C_out] -> [C_out, M] (25 KB transpose) -> [1, C_out, H, W] (free).
    return out_mc.T.reshape(N, C_out, H, W)


if __name__ == "__main__":
    key = jax.random.PRNGKey(0)
    kx, kw = jax.random.split(key)

    # Shapes implied by the module's forward pass (already tiny).
    N, C_in, H, W = 1, 1664, 7, 7
    C_out = 128

    x = jax.random.normal(kx, (N, C_in, H, W), dtype=jnp.float32)
    # Deterministic init mimicking Conv2d default (kaiming-uniform-ish scale).
    bound = 1.0 / jnp.sqrt(jnp.float32(C_in))
    weight = jax.random.uniform(
        kw, (C_out, C_in, 1, 1), minval=-bound, maxval=bound, dtype=jnp.float32
    )

    out = jax.block_until_ready(conv2d_1x1(x, weight))
    assert out.shape == (N, C_out, H, W), out.shape
    assert out.dtype == jnp.float32

    # Tight check against a reference computed on the SAME bf16-rounded
    # operands (isolates the kernel from the deliberate bf16 quantization).
    x_bf = x.astype(jnp.bfloat16).astype(jnp.float32)
    w_bf = weight.reshape(C_out, C_in).astype(jnp.bfloat16).astype(jnp.float32)
    ref_bf = jnp.einsum(
        "nchw,oc->nohw", x_bf, w_bf, precision=lax.Precision.HIGHEST
    )
    assert jnp.allclose(out, ref_bf, atol=1e-3, rtol=1e-3)

    # Loose check against the full-f32 module semantics (bf16 input rounding
    # over K=1664 stays well inside this tolerance).
    ref_f32 = jnp.einsum(
        "nchw,oc->nohw", x, weight.reshape(C_out, C_in),
        precision=lax.Precision.HIGHEST,
    )
    assert jnp.allclose(out, ref_f32, atol=3e-2, rtol=3e-2)

    print("KERNEL_OK")
</pallas_src>

<mosaic_0001>
module attributes {stable_mosaic.version = 11 : i64} {
  func.func @conv1x1_kernel(%arg0: memref<49x1664xbf16, #tpu.memory_space<vmem>>, %arg1: memref<128x1664xbf16, #tpu.memory_space<vmem>>, %arg2: memref<49x128xf32, #tpu.memory_space<vmem>>) attributes {dimension_semantics = [], scalar_prefetch = 0 : i64, scratch_operands = 0 : i64, tpu.core_type = #tpu.core_type<tc>} {
    %c0 = arith.constant 0 : index
    %c0_0 = arith.constant 0 : index
    %0 = vector.load %arg0[%c0, %c0_0] : memref<49x1664xbf16, #tpu.memory_space<vmem>>, vector<49x1664xbf16>
    %c0_1 = arith.constant 0 : index
    %c0_2 = arith.constant 0 : index
    %1 = vector.load %arg1[%c0_1, %c0_2] : memref<128x1664xbf16, #tpu.memory_space<vmem>>, vector<128x1664xbf16>
    %cst = arith.constant dense<0.000000e+00> : vector<49x128xf32>
    %2 = tpu.matmul %0, %1, %cst {dimension_numbers = #tpu.dot_dimension_numbers<[1], [1], [0], [0], [0, 0, 1, 0], [], []>} : vector<49x1664xbf16>, vector<128x1664xbf16>, vector<49x128xf32> -> vector<49x128xf32>
    %c0_3 = arith.constant 0 : index
    %c0_4 = arith.constant 0 : index
    %3 = vector.load %arg2[%c0_3, %c0_4] : memref<49x128xf32, #tpu.memory_space<vmem>>, vector<49x128xf32>
    tpu.vector_store %arg2[%c0_3, %c0_4], %2 {strides = array<i32>} : memref<49x128xf32, #tpu.memory_space<vmem>>, vector<49x128xf32>,
    return
  }
}

</mosaic_0001>

<bundles_post_ra>
// kernel: tpu_custom_call.1
= control target key start
LH: loop header
LB: loop body
LE: loop exit
PB: predicated region body
PF: predicated region fallthrough
CT: control target
= control target key end

     0   :  { %7 = vsyncpa [#allocation3], 0  ;;  %s2068_s0 = inlined_call_operand.hbm [shape: bf16[49,1664], index: 0, kind: input, shape index: {}]   ;;  %s2069_s1 = inlined_call_operand.hbm [shape: bf16[128,1664], index: 1, kind: input, shape index: {}]   ;;  %s2070_s2 = inlined_call_operand.hbm [shape: f32[49,128], index: 2, kind: output, shape index: {}]  }
   0x1   :  { %8 = vsyncpa [#allocation6], 0 }
   0x2   :  { %9 = vsyncpa [#allocation4], 0  ;;  %s2010_s9 = smov [#allocation2]   ;;  %s1938_s13 = scalar_lea.hbm %s2068_s0, 5824 }
   0x3   :  { %s15_s10 = sshll.u32 %s2010_s9, 4  ;;  %p1939_p0 = scmp.ne.s32.totalorder %s2068_s0, %s1938_s13  ;;  %s16_s10 = int_to_ptr.vmem [resolvable:$true] %s15_s10 }
   0x4   :  { %p1942_p1 = scmp.lt.u32.totalorder %s1938_s13, %s2068_s0 }
   0x6   :  { %p1944_p2 = pnand %p1942_p1, %p1939_p0 }
   0x8   :  { %1947 = shalt.err (!%p1944_p2)
}
   0x9   :  { %s1948_s18 = scalar_lea.vmem %s16_s10, 5824  ;;  %p1953_p4 = scmp.lt.s32.totalorder %s16_s10, %s16_s10 }
   0xa   :  { %p1949_p3 = scmp.ne.s32.totalorder %s16_s10, %s1948_s18  ;;  %p1954_p5 = scmp.lt.s32.totalorder %s1948_s18, %s1948_s18 }
   0xc   :  { %p1955_p6 = por %p1954_p5, %p1953_p4 }
   0xe   :  { %p1956_p7 = pnand %p1955_p6, %p1949_p3 }
  0x10   :  { %1959 = shalt.err (!%p1956_p7)
}
  0x11   :  { %s2011_s19 = smov 832   ;;  %s2012_s20 = smov 52  }
  0x12   :  { %21 = dma.hbm_to_vmem [thread:$0]  %s2068_s0, 5824, %s16_s10, [#allocation3], %s2011_s19, %s2011_s19, %s2012_s20  }
  0x13   :  { %s2013_s23 = smov [#allocation5]   ;;  %s1960_s27 = scalar_lea.hbm %s2069_s1, 13312 }
  0x14   :  { %s27_s24 = sshll.u32 %s2013_s23, 4  ;;  %p1961_p8 = scmp.ne.s32.totalorder %s2069_s1, %s1960_s27  ;;  %s28_s24 = int_to_ptr.vmem [resolvable:$true] %s27_s24 }
  0x15   :  { %p1964_p9 = scmp.lt.u32.totalorder %s1960_s27, %s2069_s1 }
  0x17   :  { %p1966_p10 = pnand %p1964_p9, %p1961_p8 }
  0x19   :  { %1969 = shalt.err (!%p1966_p10)
}
  0x1a   :  { %s1970_s4 = scalar_lea.vmem %s28_s24, 13312  ;;  %p1975_p12 = scmp.lt.s32.totalorder %s28_s24, %s28_s24 }
  0x1b   :  { %p1971_p11 = scmp.ne.s32.totalorder %s28_s24, %s1970_s4  ;;  %p1976_p13 = scmp.lt.s32.totalorder %s1970_s4, %s1970_s4 }
  0x1d   :  { %p1977_p0 = por %p1976_p13, %p1975_p12 }
  0x1f   :  { %p1978_p1 = pnand %p1977_p0, %p1971_p11 }
  0x21   :  { %1981 = shalt.err (!%p1978_p1)
}
  0x22   :  { %33 = dma.hbm_to_vmem [thread:$0]  %s2069_s1, 13312, %s28_s24, [#allocation6], %s2011_s19, %s2011_s19, %s2012_s20  }
  0x23   :  { %2004 = dma.done.wait [#allocation3], 5824  }
  0x24   :  { %2005 = vsyncadd [#allocation3], 4294961472 }
  0x25   :  { %2006 = dma.done.wait [#allocation6], 13312  }
  0x26   :  { %2007 = vsyncadd [#allocation6], 4294953984  ;;  %v1716_v0 = vld [vmem:[#allocation5 + $0x4] ss:$52 sps:$4 sm:$0xff]   ;;  %v1718_v1 = vld [vmem:[#allocation5 + $0x1c] ss:$52 sps:$4 sm:$0xff]  }
  0x27   :  { %974 = vmatprep.subr.bf16.mxu1 %v1716_v0  ;;  %v1720_v2 = vld [vmem:[#allocation5] ss:$52 sps:$4 sm:$0xff]   ;;  %v1721_v3 = vld [vmem:[#allocation5 + $0x18] ss:$52 sps:$4 sm:$0xff]   ;;  %1166 = vmatprep.subr.bf16.mxu0 %v1718_v1  ;;  %v1726_v6 = vld [vmem:[#allocation5 + $0x68] ss:$52 sps:$4 sm:$0xff]  }
  0x28   :  { %v1722_v4 = vld [vmem:[#allocation5 + $0x6c] ss:$52 sps:$4 sm:$0xff]   ;;  %975 = vmatpush1.bf16.xpose.msra.mxu1 %v1720_v2  ;;  %1167 = vmatpush1.bf16.xpose.msra.mxu0 %v1721_v3  ;;  %v1724_v5 = vld [vmem:[#allocation5 + $0x84] ss:$52 sps:$4 sm:$0xff]   ;;  %v1728_v8 = vld [vmem:[#allocation5 + $0xd4] ss:$52 sps:$4 sm:$0xff]  }
  0x29   :  { %976 = vmatprep.subr.bf16.mxu1 %v1722_v4  ;;  %1168 = vmatprep.subr.bf16.mxu0 %v1724_v5  ;;  %v1727_v7 = vld [vmem:[#allocation5 + $0x80] ss:$52 sps:$4 sm:$0xff]   ;;  %v1732_v10 = vld [vmem:[#allocation5 + $0xd0] ss:$52 sps:$4 sm:$0xff]   ;;  %v1733_v11 = vld [vmem:[#allocation5 + $0xe8] ss:$52 sps:$4 sm:$0xff]  }
  0x2a   :  { %v1730_v9 = vld [vmem:[#allocation5 + $0xec] ss:$52 sps:$4 sm:$0xff]   ;;  %v1734_v12 = vld [vmem:[#allocation5 + $0x13c] ss:$52 sps:$4 sm:$0xff]   ;;  %v1736_v13 = vld [vmem:[#allocation5 + $0x154] ss:$52 sps:$4 sm:$0xff]  }
  0x2b   :  { %v1738_v14 = vld [vmem:[#allocation5 + $0x138] ss:$52 sps:$4 sm:$0xff]   ;;  %v1739_v16 = vld [vmem:[#allocation5 + $0x150] ss:$52 sps:$4 sm:$0xff]   ;;  %v1744_v20 = vld [vmem:[#allocation5 + $0x1a0] ss:$52 sps:$4 sm:$0xff]  }
  0x2c   :  { %v1766_v15 = vld [vmem:[#allocation2 + $0x4] ss:$52 sps:$4 sm:$0xff]   ;;  %v1742_v18 = vld [vmem:[#allocation5 + $0x1bc] ss:$52 sps:$4 sm:$0xff]   ;;  %v1751_v25 = vld [vmem:[#allocation5 + $0x220] ss:$52 sps:$4 sm:$0xff]  }
  0x2d   :  { %v1740_v17 = vld [vmem:[#allocation5 + $0x1a4] ss:$52 sps:$4 sm:$0xff]   ;;  %1006 = vmatprep.mubr.bf16.mxu1 %v1766_v15  ;;  %v1746_v22 = vld [vmem:[#allocation5 + $0x20c] ss:$52 sps:$4 sm:$0xff]   ;;  %v1750_v24 = vld [vmem:[#allocation5 + $0x208] ss:$52 sps:$4 sm:$0xff]  }
  0x2e   :  { %v1772_v19 = vld [vmem:[#allocation2 + $0x1c] ss:$52 sps:$4 sm:$0xff]   ;;  %v1745_v21 = vld [vmem:[#allocation5 + $0x1b8] ss:$52 sps:$4 sm:$0xff]   ;;  %v1752_v26 = vld [vmem:[#allocation5 + $0x274] ss:$52 sps:$4 sm:$0xff]  }
  0x2f   :  { %1198 = vmatprep.mubr.bf16.mxu0 %v1772_v19  ;;  %v1748_v23 = vld [vmem:[#allocation5 + $0x224] ss:$52 sps:$4 sm:$0xff]   ;;  %v1754_v27 = vld [vmem:[#allocation5 + $0x28c] ss:$52 sps:$4 sm:$0xff]   ;;  %v1757_v29 = vld [vmem:[#allocation5 + $0x288] ss:$52 sps:$4 sm:$0xff]  }
  0x30   :  { %977 = vmatpush1.bf16.xpose.msra.mxu1 %v1726_v6  ;;  %1169 = vmatpush1.bf16.xpose.msra.mxu0 %v1727_v7  ;;  %v1756_v28 = vld [vmem:[#allocation5 + $0x270] ss:$52 sps:$4 sm:$0xff]   ;;  %v1760_v31 = vld [vmem:[#allocation5 + $0x2f4] ss:$52 sps:$4 sm:$0xff]   ;;  %v1762_v32 = vld [vmem:[#allocation5 + $0x2d8] ss:$52 sps:$4 sm:$0xff]  }
  0x31   :  { %978 = vmatprep.subr.bf16.mxu1 %v1728_v8  ;;  %1170 = vmatprep.subr.bf16.mxu0 %v1730_v9  ;;  %v1758_v30 = vld [vmem:[#allocation5 + $0x2dc] ss:$52 sps:$4 sm:$0xff]   ;;  %v1769_v34 = vld [vmem:[#allocation5 + $0xc] ss:$52 sps:$4 sm:$0xff]   ;;  %v1775_v35 = vld [vmem:[#allocation5 + $0x24] ss:$52 sps:$4 sm:$0xff]  }
  0x32   :  { %v1763_v33 = vld [vmem:[#allocation5 + $0x2f0] ss:$52 sps:$4 sm:$0xff]   ;;  %v1764_v36 = vld [vmem:[#allocation2] ss:$52 sps:$4 sm:$0xff]   ;;  %v1770_v38 = vld [vmem:[#allocation2 + $0x18] ss:$52 sps:$4 sm:$0xff]  }
  0x33   :  { %v1767_v37 = vld [vmem:[#allocation5 + $0x8] ss:$52 sps:$4 sm:$0xff]   ;;  %v1773_v39 = vld [vmem:[#allocation5 + $0x20] ss:$52 sps:$4 sm:$0xff]   ;;  %v1802_v43 = vld [vmem:[#allocation2 + $0x84] ss:$52 sps:$4 sm:$0xff]  }
  0x34   :  { %v1778_v40 = vld [vmem:[#allocation5 + $0x74] ss:$52 sps:$4 sm:$0xff]   ;;  %v1781_v41 = vld [vmem:[#allocation5 + $0x8c] ss:$52 sps:$4 sm:$0xff]   ;;  %v1776_v44 = vld [vmem:[#allocation5 + $0x70] ss:$52 sps:$4 sm:$0xff]  }
  0x35   :  { %v1800_v42 = vld [vmem:[#allocation2 + $0x6c] ss:$52 sps:$4 sm:$0xff]   ;;  %v1779_v45 = vld [vmem:[#allocation5 + $0x88] ss:$52 sps:$4 sm:$0xff]   ;;  %v1782_v52 = vld [vmem:[#allocation5 + $0xd8] ss:$52 sps:$4 sm:$0xff]  }
  0x36   :  { %v1804_v46 = vld [vmem:[#allocation2 + $0x68] ss:$52 sps:$4 sm:$0xff]   ;;  %v1805_v47 = vld [vmem:[#allocation2 + $0x80] ss:$52 sps:$4 sm:$0xff]   ;;  %v1816_v54 = vld [vmem:[#allocation2 + $0xd0] ss:$52 sps:$4 sm:$0xff]  }
  0x37   :  { %v1784_v48 = vld [vmem:[#allocation5 + $0xdc] ss:$52 sps:$4 sm:$0xff]   ;;  %v1787_v49 = vld [vmem:[#allocation5 + $0xf4] ss:$52 sps:$4 sm:$0xff]   ;;  %v1790_v58 = vld [vmem:[#allocation5 + $0x144] ss:$52 sps:$4 sm:$0xff]  }
  0x38   :  { %979 = vmatpush1.bf16.xpose.msra.mxu1 %v1732_v10  ;;  %1171 = vmatpush1.bf16.xpose.msra.mxu0 %v1733_v11  ;;  %v1812_v50 = vld [vmem:[#allocation2 + $0xd4] ss:$52 sps:$4 sm:$0xff]   ;;  %v1814_v51 = vld [vmem:[#allocation2 + $0xec] ss:$52 sps:$4 sm:$0xff]   ;;  %v1785_v53 = vld [vmem:[#allocation5 + $0xf0] ss:$52 sps:$4 sm:$0xff]  }
  0x39   :  { %980 = vmatprep.subr.bf16.mxu1 %v1734_v12  ;;  %1172 = vmatprep.subr.bf16.mxu0 %v1736_v13  ;;  %v1817_v55 = vld [vmem:[#allocation2 + $0xe8] ss:$52 sps:$4 sm:$0xff]   ;;  %v86_v57 = vld [vmem:[#allocation2 + $0x150] sm:$0x11]  ;;  %v1788_v62 = vld [vmem:[#allocation5 + $0x140] ss:$52 sps:$4 sm:$0xff]  }
  0x3a   :  { %v83_v56 = vld [vmem:[#allocation2 + $0x138] sm:$0x11]  ;;  %v1493_v61 = vcombine.high %v86_v57, %v86_v57  ;;  %v1492_v1 = vcombine.low %v86_v57, %v86_v57  ;;  %v1799_v3 = vld [vmem:[#allocation5 + $0x1c4] ss:$52 sps:$4 sm:$0xff]   ;;  %v1836_v4 = vld [vmem:[#allocation2 + $0xc] ss:$52 sps:$4 sm:$0xff]  }
  0x3b   :  { %v1793_v59 = vld [vmem:[#allocation5 + $0x15c] ss:$52 sps:$4 sm:$0xff]   ;;  %v1487_v60 = vcombine.high %v83_v56, %v83_v56  ;;  %v1791_v63 = vld [vmem:[#allocation5 + $0x158] ss:$52 sps:$4 sm:$0xff]   ;;  %v1486_v0 = vcombine.low %v83_v56, %v83_v56  ;;  %v1797_v7 = vld [vmem:[#allocation5 + $0x1c0] ss:$52 sps:$4 sm:$0xff]  }
  0x3c   :  { %v1796_v2 = vld [vmem:[#allocation5 + $0x1ac] ss:$52 sps:$4 sm:$0xff]   ;;  %v1794_v6 = vld [vmem:[#allocation5 + $0x1a8] ss:$52 sps:$4 sm:$0xff]   ;;  %v1806_v10 = vld [vmem:[#allocation5 + $0x210] ss:$52 sps:$4 sm:$0xff]  }
  0x3d   :  { %v1842_v5 = vld [vmem:[#allocation2 + $0x24] ss:$52 sps:$4 sm:$0xff]   ;;  %v1808_v8 = vld [vmem:[#allocation5 + $0x214] ss:$52 sps:$4 sm:$0xff]   ;;  %v1820_v12 = vld [vmem:[#allocation5 + $0x27c] ss:$52 sps:$4 sm:$0xff]  }
  0x3e   :  { %v1811_v9 = vld [vmem:[#allocation5 + $0x22c] ss:$52 sps:$4 sm:$0xff]   ;;  %v1809_v11 = vld [vmem:[#allocation5 + $0x228] ss:$52 sps:$4 sm:$0xff]   ;;  %v1821_v15 = vld [vmem:[#allocation5 + $0x290] ss:$52 sps:$4 sm:$0xff]  }
  0x3f   :  { %v1823_v13 = vld [vmem:[#allocation5 + $0x294] ss:$52 sps:$4 sm:$0xff]   ;;  %v1831_v19 = vld [vmem:[#allocation5 + $0x2f8] ss:$52 sps:$4 sm:$0xff]   ;;  %v1872_v56 = vld [vmem:[#allocation5 + $0x1b0] ss:$52 sps:$4 sm:$0xff]  }
  0x40   :  { %981 = vmatpush1.bf16.xpose.msra.mxu1 %v1738_v14  ;;  %1173 = vmatpush1.bf16.xpose.msra.mxu0 %v1739_v16  ;;  %v1818_v14 = vld [vmem:[#allocation5 + $0x278] ss:$52 sps:$4 sm:$0xff]   ;;  %v1875_v57 = vld [vmem:[#allocation5 + $0x1c8] ss:$52 sps:$4 sm:$0xff]   ;;  %s2014_s1 = smov [#allocation7]  }
  0x41   :  { %982 = vmatprep.subr.bf16.mxu1 %v1740_v17  ;;  %1174 = vmatprep.subr.bf16.mxu0 %v1742_v18  ;;  %v1830_v16 = vld [vmem:[#allocation5 + $0x2e4] ss:$52 sps:$4 sm:$0xff]   ;;  %v1833_v17 = vld [vmem:[#allocation5 + $0x2fc] ss:$52 sps:$4 sm:$0xff]   ;;  %v1828_v18 = vld [vmem:[#allocation5 + $0x2e0] ss:$52 sps:$4 sm:$0xff]  }
  0x42   :  { %s1434_s6 = sshll.u32 %s2014_s1, 4  ;;  %s1435_s6 = int_to_ptr.vmem [resolvable:$true] %s1434_s6 }
  0x43   :  { %s1982_s7 = scalar_lea.vmem %s1435_s6, 896  ;;  %p1987_p3 = scmp.lt.s32.totalorder %s1435_s6, %s1435_s6 }
  0x44   :  { %p1983_p2 = scmp.ne.s32.totalorder %s1435_s6, %s1982_s7  ;;  %p1988_p4 = scmp.lt.s32.totalorder %s1982_s7, %s1982_s7 }
  0x46   :  { %p1989_p5 = por %p1988_p4, %p1987_p3 }
  0x48   :  { %983 = vmatpush1.bf16.xpose.msra.mxu1 %v1744_v20  ;;  %1175 = vmatpush1.bf16.xpose.msra.mxu0 %v1745_v21  ;;  %v1839_v20 = vld [vmem:[#allocation5 + $0x14] ss:$52 sps:$4 sm:$0xff]   ;;  %v1845_v21 = vld [vmem:[#allocation5 + $0x2c] ss:$52 sps:$4 sm:$0xff]   ;;  %p1990_p6 = pnand %p1989_p5, %p1983_p2 }
  0x49   :  { %984 = vmatprep.subr.bf16.mxu1 %v1746_v22  ;;  %1176 = vmatprep.subr.bf16.mxu0 %v1748_v23  ;;  %v1834_v22 = vld [vmem:[#allocation2 + $0x8] ss:$52 sps:$4 sm:$0xff]   ;;  %v1840_v23 = vld [vmem:[#allocation2 + $0x20] ss:$52 sps:$4 sm:$0xff]  }
  0x50   :  { %985 = vmatpush1.bf16.xpose.msra.mxu1 %v1750_v24  ;;  %1177 = vmatpush1.bf16.xpose.msra.mxu0 %v1751_v25  ;;  %v1837_v24 = vld [vmem:[#allocation5 + $0x10] ss:$52 sps:$4 sm:$0xff]   ;;  %v1843_v25 = vld [vmem:[#allocation5 + $0x28] ss:$52 sps:$4 sm:$0xff]  }
  0x51   :  { %986 = vmatprep.subr.bf16.mxu1 %v1752_v26  ;;  %1178 = vmatprep.subr.bf16.mxu0 %v1754_v27  ;;  %v1846_v26 = vld [vmem:[#allocation2 + $0x74] ss:$52 sps:$4 sm:$0xff]  }
  0x52   :  { %v1851_v27 = vld [vmem:[#allocation5 + $0x7c] ss:$52 sps:$4 sm:$0xff]  }
  0x58   :  { %987 = vmatpush1.bf16.xpose.msra.mxu1 %v1756_v28  ;;  %1179 = vmatpush1.bf16.xpose.msra.mxu0 %v1757_v29  ;;  %v1854_v28 = vld [vmem:[#allocation5 + $0x94] ss:$52 sps:$4 sm:$0xff]  }
  0x59   :  { %988 = vmatprep.subr.bf16.mxu1 %v1758_v30  ;;  %1180 = vmatprep.subr.bf16.mxu0 %v1760_v31  ;;  %v1878_v29 = vld [vmem:[#allocation2 + $0x8c] ss:$52 sps:$4 sm:$0xff]   ;;  %v1848_v30 = vld [vmem:[#allocation2 + $0x70] ss:$52 sps:$4 sm:$0xff]   ;;  %v1880_v31 = vld [vmem:[#allocation2 + $0x88] ss:$52 sps:$4 sm:$0xff]  }
  0x60   :  { %989 = vmatpush1.bf16.xpose.msra.mxu1 %v1762_v32  ;;  %1181 = vmatpush1.bf16.xpose.msra.mxu0 %v1763_v33  ;;  %v1849_v32 = vld [vmem:[#allocation5 + $0x78] ss:$52 sps:$4 sm:$0xff]   ;;  %v1852_v33 = vld [vmem:[#allocation5 + $0x90] ss:$52 sps:$4 sm:$0xff]  }
  0x61   :  { %1038 = vmatprep.subr.bf16.mxu1 %v1769_v34  ;;  %1230 = vmatprep.subr.bf16.mxu0 %v1775_v35  ;;  %v1855_v34 = vld [vmem:[#allocation2 + $0xdc] ss:$52 sps:$4 sm:$0xff]  }
  0x62   :  { %v1860_v35 = vld [vmem:[#allocation5 + $0xe4] ss:$52 sps:$4 sm:$0xff]  }
  0x67   :  { %1007 = vmatmul.mubr.bf16.vlgmr.msra.gmra.mrb[0].mxu1 %v1764_v36  ;;  %1199 = vmatmul.mubr.bf16.vlgmr.msra.gmra.mrb[0].mxu0 %v1770_v38  ;;  %v1863_v36 = vld [vmem:[#allocation5 + $0xfc] ss:$52 sps:$4 sm:$0xff]   ;;  %v84_v38 = vld [vmem:[#allocation2 + $0x140] sm:$0x11] }
  0x68   :  { %1039 = vmatpush1.bf16.xpose.msra.mxu1 %v1767_v37  ;;  %1231 = vmatpush1.bf16.xpose.msra.mxu0 %v1773_v39  ;;  %v1887_v37 = vld [vmem:[#allocation2 + $0xf4] ss:$52 sps:$4 sm:$0xff]   ;;  %v1857_v39 = vld [vmem:[#allocation2 + $0xd8] ss:$52 sps:$4 sm:$0xff]  }
  0x69   :  { %1040 = vmatprep.subr.bf16.mxu1 %v1778_v40  ;;  %1232 = vmatprep.subr.bf16.mxu0 %v1781_v41  ;;  %v1889_v40 = vld [vmem:[#allocation2 + $0xf0] ss:$52 sps:$4 sm:$0xff]   ;;  %v87_v41 = vld [vmem:[#allocation2 + $0x158] sm:$0x11] }
  0x6a   :  { %1014 = vmatprep.mubr.bf16.mxu1 %v1800_v42  ;;  %1206 = vmatprep.mubr.bf16.mxu0 %v1802_v43  ;;  %v1858_v42 = vld [vmem:[#allocation5 + $0xe0] ss:$52 sps:$4 sm:$0xff]   ;;  %v1861_v43 = vld [vmem:[#allocation5 + $0xf8] ss:$52 sps:$4 sm:$0xff]  }
  0x6f   :  { %1015 = vmatmul.mubr.bf16.gmra.mrb[4].mxu1 %v1804_v46  ;;  %1207 = vmatmul.mubr.bf16.gmra.mrb[4].mxu0 %v1805_v47  ;;  %v1871_v46 = vld [vmem:[#allocation5 + $0x164] ss:$52 sps:$4 sm:$0xff]   ;;  %v1495_v47 = vcombine.high %v87_v41, %v87_v41 }
  0x70   :  { %1041 = vmatpush1.bf16.xpose.msra.mxu1 %v1776_v44  ;;  %1233 = vmatpush1.bf16.xpose.msra.mxu0 %v1779_v45  ;;  %v1489_v44 = vcombine.high %v84_v38, %v84_v38  ;;  %v1868_v45 = vld [vmem:[#allocation5 + $0x14c] ss:$52 sps:$4 sm:$0xff]  }
  0x71   :  { %1042 = vmatprep.subr.bf16.mxu1 %v1784_v48  ;;  %1234 = vmatprep.subr.bf16.mxu0 %v1787_v49  ;;  %v1488_v48 = vcombine.low %v84_v38, %v84_v38  ;;  %v1494_v49 = vcombine.low %v87_v41, %v87_v41 }
  0x72   :  { %1022 = vmatprep.mubr.bf16.mxu1 %v1812_v50  ;;  %1214 = vmatprep.mubr.bf16.mxu0 %v1814_v51  ;;  %v1866_v50 = vld [vmem:[#allocation5 + $0x148] ss:$52 sps:$4 sm:$0xff]   ;;  %v1869_v51 = vld [vmem:[#allocation5 + $0x160] ss:$52 sps:$4 sm:$0xff]  }
  0x77   :  { %1023 = vmatmul.mubr.bf16.gmra.mrb[8].mxu1 %v1816_v54  ;;  %1215 = vmatmul.mubr.bf16.gmra.mrb[8].mxu0 %v1817_v55  ;;  %v1906_v54 = vld [vmem:[#allocation2 + $0x14] ss:$52 sps:$4 sm:$0xff]   ;;  %v1909_v55 = vld [vmem:[#allocation2 + $0x2c] ss:$52 sps:$4 sm:$0xff]  }
  0x78   :  { %1043 = vmatpush1.bf16.xpose.msra.mxu1 %v1782_v52  ;;  %1235 = vmatpush1.bf16.xpose.msra.mxu0 %v1785_v53  ;;  %v1874_v52 = vld [vmem:[#allocation5 + $0x1b4] ss:$52 sps:$4 sm:$0xff]   ;;  %v1877_v53 = vld [vmem:[#allocation5 + $0x1cc] ss:$52 sps:$4 sm:$0xff]  }
  0x79   :  { %1044 = vmatprep.subr.bf16.mxu1 %v1790_v58  ;;  %1236 = vmatprep.subr.bf16.mxu0 %v1793_v59  ;;  %v1883_v58 = vld [vmem:[#allocation5 + $0x21c] ss:$52 sps:$4 sm:$0xff]   ;;  %v1886_v59 = vld [vmem:[#allocation5 + $0x234] ss:$52 sps:$4 sm:$0xff]  }
  0x7a   :  { %1030 = vmatprep.mubr.bf16.mxu1 %v1487_v60  ;;  %1222 = vmatprep.mubr.bf16.mxu0 %v1493_v61  ;;  %v1881_v60 = vld [vmem:[#allocation5 + $0x218] ss:$52 sps:$4 sm:$0xff]   ;;  %v1884_v61 = vld [vmem:[#allocation5 + $0x230] ss:$52 sps:$4 sm:$0xff]  }
  0x7f   :  { %1031 = vmatmul.mubr.bf16.gmra.mrb[12].mxu1 %v1486_v0  ;;  %1223 = vmatmul.mubr.bf16.gmra.mrb[12].mxu0 %v1492_v1  ;;  %v1890_v0 = vld [vmem:[#allocation5 + $0x280] ss:$52 sps:$4 sm:$0xff]   ;;  %v1893_v1 = vld [vmem:[#allocation5 + $0x298] ss:$52 sps:$4 sm:$0xff]  }
  0x80   :  { %1045 = vmatpush1.bf16.xpose.msra.mxu1 %v1788_v62  ;;  %1237 = vmatpush1.bf16.xpose.msra.mxu0 %v1791_v63  ;;  %v1892_v62 = vld [vmem:[#allocation5 + $0x284] ss:$52 sps:$4 sm:$0xff]   ;;  %v1895_v63 = vld [vmem:[#allocation5 + $0x29c] ss:$52 sps:$4 sm:$0xff]  }
  0x81   :  { %1046 = vmatprep.subr.bf16.mxu1 %v1796_v2  ;;  %1238 = vmatprep.subr.bf16.mxu0 %v1799_v3  ;;  %v1900_v2 = vld [vmem:[#allocation5 + $0x2ec] ss:$52 sps:$4 sm:$0xff]   ;;  %v1903_v3 = vld [vmem:[#allocation5 + $0x304] ss:$52 sps:$4 sm:$0xff]  }
  0x82   :  { %1070 = vmatprep.mubr.bf16.mxu1 %v1836_v4  ;;  %1262 = vmatprep.mubr.bf16.mxu0 %v1842_v5  ;;  %v1898_v4 = vld [vmem:[#allocation5 + $0x2e8] ss:$52 sps:$4 sm:$0xff]   ;;  %v1901_v5 = vld [vmem:[#allocation5 + $0x300] ss:$52 sps:$4 sm:$0xff]  }
  0x88   :  { %1047 = vmatpush1.bf16.xpose.msra.mxu1 %v1794_v6  ;;  %1239 = vmatpush1.bf16.xpose.msra.mxu0 %v1797_v7  ;;  %v1910_v6 = vld [vmem:[#allocation5 + $0x30] ss:$52 sps:$4 sm:$0xff]  }
  0x89   :  { %1048 = vmatprep.subr.bf16.mxu1 %v1808_v8  ;;  %1240 = vmatprep.subr.bf16.mxu0 %v1811_v9  ;;  %v1904_v7 = vld [vmem:[#allocation2 + $0x10] ss:$52 sps:$4 sm:$0xff]   ;;  %v1907_v8 = vld [vmem:[#allocation2 + $0x28] ss:$52 sps:$4 sm:$0xff]  }
  0x8a   :  { %v1911_v9 = vld [vmem:[#allocation2 + $0x7c] ss:$52 sps:$4 sm:$0xff]  }
  0x90   :  { %1049 = vmatpush1.bf16.xpose.msra.mxu1 %v1806_v10  ;;  %1241 = vmatpush1.bf16.xpose.msra.mxu0 %v1809_v11  ;;  %v1913_v10 = vld [vmem:[#allocation2 + $0x94] ss:$52 sps:$4 sm:$0xff]   ;;  %v1917_v11 = vld [vmem:[#allocation5 + $0x98] ss:$52 sps:$4 sm:$0xff]  }
  0x91   :  { %1050 = vmatprep.subr.bf16.mxu1 %v1820_v12  ;;  %1242 = vmatprep.subr.bf16.mxu0 %v1823_v13  ;;  %v1915_v12 = vld [vmem:[#allocation2 + $0x78] ss:$52 sps:$4 sm:$0xff]   ;;  %v1916_v13 = vld [vmem:[#allocation2 + $0x90] ss:$52 sps:$4 sm:$0xff]  }
  0x98   :  { %1051 = vmatpush1.bf16.xpose.msra.mxu1 %v1818_v14  ;;  %1243 = vmatpush1.bf16.xpose.msra.mxu0 %v1821_v15  ;;  %v1918_v14 = vld [vmem:[#allocation2 + $0xe4] ss:$52 sps:$4 sm:$0xff]   ;;  %v1920_v15 = vld [vmem:[#allocation2 + $0xfc] ss:$52 sps:$4 sm:$0xff]  }
  0x99   :  { %1052 = vmatprep.subr.bf16.mxu1 %v1830_v16  ;;  %1244 = vmatprep.subr.bf16.mxu0 %v1833_v17  ;;  %v1924_v16 = vld [vmem:[#allocation5 + $0x100] ss:$52 sps:$4 sm:$0xff]  }
  0x9a   :  { %v85_v17 = vld [vmem:[#allocation2 + $0x148] sm:$0x11] }
  0xa0   :  { %1053 = vmatpush1.bf16.xpose.msra.mxu1 %v1828_v18  ;;  %1245 = vmatpush1.bf16.xpose.msra.mxu0 %v1831_v19  ;;  %v1922_v18 = vld [vmem:[#allocation2 + $0xe0] ss:$52 sps:$4 sm:$0xff]   ;;  %v1923_v19 = vld [vmem:[#allocation2 + $0xf8] ss:$52 sps:$4 sm:$0xff]  }
  0xa1   :  { %1102 = vmatprep.subr.bf16.mxu1 %v1839_v20  ;;  %1294 = vmatprep.subr.bf16.mxu0 %v1845_v21  ;;  %v88_v20 = vld [vmem:[#allocation2 + $0x160] sm:$0x11]  ;;  %v1491_v21 = vcombine.high %v85_v17, %v85_v17 }
  0xa7   :  { %1071 = vmatmul.mubr.bf16.vlgmr.msra.gmra.mrb[0].mxu1 %v1834_v22  ;;  %1263 = vmatmul.mubr.bf16.vlgmr.msra.gmra.mrb[0].mxu0 %v1840_v23  ;;  %v1927_v22 = vld [vmem:[#allocation5 + $0x168] ss:$52 sps:$4 sm:$0xff]   ;;  %v1497_v23 = vcombine.high %v88_v20, %v88_v20 }
  0xa8   :  { %1103 = vmatpush1.bf16.xpose.msra.mxu1 %v1837_v24  ;;  %1295 = vmatpush1.bf16.xpose.msra.mxu0 %v1843_v25  ;;  %v1490_v24 = vcombine.low %v85_v17, %v85_v17  ;;  %v1496_v25 = vcombine.low %v88_v20, %v88_v20 }
  0xa9   :  { %1078 = vmatprep.mubr.bf16.mxu1 %v1846_v26  ;;  %1104 = vmatprep.subr.bf16.mxu1 %v1851_v27  ;;  %v1930_v26 = vld [vmem:[#allocation5 + $0x1d0] ss:$52 sps:$4 sm:$0xff]  }
  0xaa   :  { %1296 = vmatprep.subr.bf16.mxu0 %v1854_v28  ;;  %1270 = vmatprep.mubr.bf16.mxu0 %v1878_v29  ;;  %v1934_v27 = vld [vmem:[#allocation2 + $0x30] ss:$52 sps:$4 sm:$0xff]   ;;  %v1935_v28 = vld [vmem:[#allocation2 + $0x100] ss:$52 sps:$4 sm:$0xff]  }
  0xab   :  { %v1931_v29 = vld [vmem:[#allocation5 + $0x238] ss:$52 sps:$4 sm:$0xff]  }
  0xaf   :  { %1079 = vmatmul.mubr.bf16.gmra.mrb[4].mxu1 %v1848_v30  ;;  %1271 = vmatmul.mubr.bf16.gmra.mrb[4].mxu0 %v1880_v31  ;;  %v1932_v30 = vld [vmem:[#allocation5 + $0x2a0] ss:$52 sps:$4 sm:$0xff]   ;;  %v1933_v31 = vld [vmem:[#allocation5 + $0x308] ss:$52 sps:$4 sm:$0xff]  }
  0xb0   :  { %1105 = vmatpush1.bf16.xpose.msra.mxu1 %v1849_v32  ;;  %1297 = vmatpush1.bf16.xpose.msra.mxu0 %v1852_v33  ;;  %v1936_v32 = vld [vmem:[#allocation2 + $0x98] ss:$52 sps:$4 sm:$0xff]   ;;  %v1937_v33 = vld [vmem:[#allocation2 + $0x168] ss:$0 sps:$4 sm:$0x11]  }
  0xb1   :  { %1086 = vmatprep.mubr.bf16.mxu1 %v1855_v34  ;;  %1106 = vmatprep.subr.bf16.mxu1 %v1860_v35 }
  0xb2   :  { %1298 = vmatprep.subr.bf16.mxu0 %v1863_v36  ;;  %1278 = vmatprep.mubr.bf16.mxu0 %v1887_v37 }
  0xb7   :  { %1087 = vmatmul.mubr.bf16.gmra.mrb[8].mxu1 %v1857_v39  ;;  %1279 = vmatmul.mubr.bf16.gmra.mrb[8].mxu0 %v1889_v40 }
  0xb8   :  { %1107 = vmatpush1.bf16.xpose.msra.mxu1 %v1858_v42  ;;  %1299 = vmatpush1.bf16.xpose.msra.mxu0 %v1861_v43 }
  0xb9   :  { %1094 = vmatprep.mubr.bf16.mxu1 %v1489_v44  ;;  %1108 = vmatprep.subr.bf16.mxu1 %v1868_v45 }
  0xba   :  { %1300 = vmatprep.subr.bf16.mxu0 %v1871_v46  ;;  %1286 = vmatprep.mubr.bf16.mxu0 %v1495_v47 }
  0xbf   :  { %1095 = vmatmul.mubr.bf16.gmra.mrb[16].mxu1 %v1488_v48  ;;  %1287 = vmatmul.mubr.bf16.gmra.mrb[16].mxu0 %v1494_v49 }
  0xc0   :  { %1109 = vmatpush1.bf16.xpose.msra.mxu1 %v1866_v50  ;;  %1301 = vmatpush1.bf16.xpose.msra.mxu0 %v1869_v51 }
  0xc1   :  { %1110 = vmatprep.subr.bf16.mxu1 %v1874_v52  ;;  %1302 = vmatprep.subr.bf16.mxu0 %v1877_v53 }
  0xc2   :  { %1134 = vmatprep.mubr.bf16.mxu1 %v1906_v54  ;;  %1326 = vmatprep.mubr.bf16.mxu0 %v1909_v55 }
  0xc8   :  { %1111 = vmatpush1.bf16.xpose.msra.mxu1 %v1872_v56  ;;  %1303 = vmatpush1.bf16.xpose.msra.mxu0 %v1875_v57 }
  0xc9   :  { %1112 = vmatprep.subr.bf16.mxu1 %v1883_v58  ;;  %1304 = vmatprep.subr.bf16.mxu0 %v1886_v59 }
  0xd0   :  { %1113 = vmatpush1.bf16.xpose.msra.mxu1 %v1881_v60  ;;  %1305 = vmatpush1.bf16.xpose.msra.mxu0 %v1884_v61 }
  0xd1   :  { %1114 = vmatprep.subr.bf16.mxu1 %v1892_v62  ;;  %1306 = vmatprep.subr.bf16.mxu0 %v1895_v63 }
  0xd8   :  { %1115 = vmatpush1.bf16.xpose.msra.mxu1 %v1890_v0  ;;  %1307 = vmatpush1.bf16.xpose.msra.mxu0 %v1893_v1 }
  0xd9   :  { %1116 = vmatprep.subr.bf16.mxu1 %v1900_v2  ;;  %1308 = vmatprep.subr.bf16.mxu0 %v1903_v3 }
  0xe0   :  { %1117 = vmatpush1.bf16.xpose.msra.mxu1 %v1898_v4  ;;  %1309 = vmatpush1.bf16.xpose.msra.mxu0 %v1901_v5 }
  0xe1   :  { %1615 = vmatprep.subr.bf16.mxu0 %v1910_v6  ;;  %1639 = vmatprep.subr.bf16.mxu1 %v1910_v6 }
  0xe7   :  { %1135 = vmatmul.mubr.bf16.vlgmr.msra.gmra.mrb[0].mxu1 %v1904_v7  ;;  %1327 = vmatmul.mubr.bf16.vlgmr.msra.gmra.mrb[0].mxu0 %v1907_v8 }
  0xe8   :  { %1616 = vmatpush3.bf16.xpose.msra.mxu0 %v1910_v6  ;;  %1647 = vmatpush3.bf16.xpose.msra.mxu1 %v1910_v6 }
  0xe9   :  { %1142 = vmatprep.mubr.bf16.mxu1 %v1911_v9  ;;  %1334 = vmatprep.mubr.bf16.mxu0 %v1913_v10 }
  0xea   :  { %1617 = vmatprep.subr.bf16.mxu0 %v1917_v11  ;;  %1640 = vmatprep.subr.bf16.mxu1 %v1917_v11 }
  0xef   :  { %1143 = vmatmul.mubr.bf16.gmra.mrb[4].mxu1 %v1915_v12  ;;  %1335 = vmatmul.mubr.bf16.gmra.mrb[4].mxu0 %v1916_v13 }
  0xf0   :  { %1618 = vmatpush3.bf16.xpose.msra.mxu0 %v1917_v11  ;;  %1648 = vmatpush3.bf16.xpose.msra.mxu1 %v1917_v11 }
  0xf1   :  { %1150 = vmatprep.mubr.bf16.mxu1 %v1918_v14  ;;  %1342 = vmatprep.mubr.bf16.mxu0 %v1920_v15 }
  0xf2   :  { %1619 = vmatprep.subr.bf16.mxu0 %v1924_v16  ;;  %1641 = vmatprep.subr.bf16.mxu1 %v1924_v16 }
  0xf7   :  { %1151 = vmatmul.mubr.bf16.gmra.mrb[8].mxu1 %v1922_v18  ;;  %1343 = vmatmul.mubr.bf16.gmra.mrb[8].mxu0 %v1923_v19 }
  0xf8   :  { %1620 = vmatpush3.bf16.xpose.msra.mxu0 %v1924_v16  ;;  %1649 = vmatpush3.bf16.xpose.msra.mxu1 %v1924_v16 }
  0xf9   :  { %1158 = vmatprep.mubr.bf16.mxu1 %v1491_v21  ;;  %1621 = vmatprep.subr.bf16.mxu0 %v1927_v22 }
  0xfa   :  { %1642 = vmatprep.subr.bf16.mxu1 %v1927_v22  ;;  %1350 = vmatprep.mubr.bf16.mxu0 %v1497_v23 }
  0xff   :  { %1159 = vmatmul.mubr.bf16.gmra.mrb[20].mxu1 %v1490_v24  ;;  %1351 = vmatmul.mubr.bf16.gmra.mrb[20].mxu0 %v1496_v25 }
 0x100   :  { %1622 = vmatpush3.bf16.xpose.msra.mxu0 %v1927_v22  ;;  %1650 = vmatpush3.bf16.xpose.msra.mxu1 %v1927_v22 }
 0x101   :  { %1623 = vmatprep.subr.bf16.mxu0 %v1930_v26  ;;  %1643 = vmatprep.subr.bf16.mxu1 %v1930_v26 }
 0x102   :  { %1631 = vmatprep.mubr.bf16.mxu0 %v1934_v27  ;;  %1635 = vmatprep.mubr.bf16.mxu1 %v1935_v28 }
 0x108   :  { %1624 = vmatpush3.bf16.xpose.msra.mxu0 %v1930_v26  ;;  %1651 = vmatpush3.bf16.xpose.msra.mxu1 %v1930_v26 }
 0x109   :  { %1625 = vmatprep.subr.bf16.mxu0 %v1931_v29  ;;  %1644 = vmatprep.subr.bf16.mxu1 %v1931_v29 }
 0x110   :  { %1626 = vmatpush3.bf16.xpose.msra.mxu0 %v1931_v29  ;;  %1652 = vmatpush3.bf16.xpose.msra.mxu1 %v1931_v29 }
 0x111   :  { %1627 = vmatprep.subr.bf16.mxu0 %v1932_v30  ;;  %1645 = vmatprep.subr.bf16.mxu1 %v1932_v30 }
 0x118   :  { %1628 = vmatpush3.bf16.xpose.msra.mxu0 %v1932_v30  ;;  %1653 = vmatpush3.bf16.xpose.msra.mxu1 %v1932_v30 }
 0x119   :  { %1629 = vmatprep.subr.bf16.mxu0 %v1933_v31  ;;  %1646 = vmatprep.subr.bf16.mxu1 %v1933_v31 }
 0x120   :  { %1630 = vmatpush3.bf16.xpose.msra.mxu0 %v1933_v31  ;;  %1654 = vmatpush3.bf16.xpose.msra.mxu1 %v1933_v31 }
 0x127   :  { %1632 = vmatmul.mubr.bf16.vlgmr.msra.gmra.mrb[24].mxu0 %v1936_v32  ;;  %1636 = vmatmul.mubr.bf16.vlgmr.msra.gmra.mrb[24].mxu1 %v1937_v33 }
 0x152   :  { %v1032_v34 = vpop.f32.mrb[12].mxu1  ;;  %v1224_v35 = vpop.f32.mrb[12].mxu0 }
 0x153   :  { %v1034_v36 = vpop.f32.mrb[13].mxu1  ;;  %v1226_v37 = vpop.f32.mrb[13].mxu0 }
 0x154   :  { %v1035_v38 = vpop.f32.mrb[14].mxu1  ;;  %v1227_v39 = vpop.f32.mrb[14].mxu0 }
 0x155   :  { %v1036_v40 = vpop.f32.mrb[15].mxu1  ;;  %v1228_v41 = vpop.f32.mrb[15].mxu0 }
 0x192   :  { %v1096_v42 = vpop.f32.mrb[16].mxu1  ;;  %v1288_v43 = vpop.f32.mrb[16].mxu0 }
 0x193   :  { %v1097_v44 = vadd.f32 %v1096_v42, %v1032_v34  ;;  %v1098_v45 = vpop.f32.mrb[17].mxu1  ;;  %v1290_v46 = vpop.f32.mrb[17].mxu0 }
 0x194   :  { %v1099_v47 = vpop.f32.mrb[18].mxu1  ;;  %v1291_v48 = vpop.f32.mrb[18].mxu0 }
 0x195   :  { %v1100_v49 = vpop.f32.mrb[19].mxu1  ;;  %v1292_v50 = vpop.f32.mrb[19].mxu0 }
 0x1ba   :  { %v1136_v51 = vpop.f32.mrb[0].mxu1  ;;  %v1328_v52 = vpop.f32.mrb[0].mxu0 }
 0x1bb   :  { %v1655_v53 = vadd.f32 %v1328_v52, %v1136_v51  ;;  %v1138_v54 = vpop.f32.mrb[1].mxu1  ;;  %v1330_v55 = vpop.f32.mrb[1].mxu0 }
 0x1bc   :  { %v1139_v56 = vpop.f32.mrb[2].mxu1  ;;  %v1331_v57 = vpop.f32.mrb[2].mxu0 }
 0x1bd   :  { %v1656_v58 = vadd.f32 %v1331_v57, %v1139_v56  ;;  %v1141_v59 = vpop.f32.mrb[3].mxu1  ;;  %v1333_v60 = vpop.f32.mrb[3].mxu0 }
 0x1c2   :  { %v1144_v61 = vpop.f32.mrb[4].mxu1  ;;  %v1336_v62 = vpop.f32.mrb[4].mxu0 }
 0x1c3   :  { %v1657_v63 = vadd.f32 %v1336_v62, %v1144_v61  ;;  %v1146_v0 = vpop.f32.mrb[5].mxu1  ;;  %v1338_v1 = vpop.f32.mrb[5].mxu0 }
 0x1c4   :  { %v1147_v2 = vpop.f32.mrb[6].mxu1  ;;  %v1339_v3 = vpop.f32.mrb[6].mxu0 }
 0x1c5   :  { %v1658_v4 = vadd.f32 %v1339_v3, %v1147_v2  ;;  %v1149_v5 = vpop.f32.mrb[7].mxu1  ;;  %v1341_v6 = vpop.f32.mrb[7].mxu0 }
 0x1ca   :  { %v1152_v7 = vpop.f32.mrb[8].mxu1  ;;  %v1344_v8 = vpop.f32.mrb[8].mxu0 }
 0x1cb   :  { %v1659_v9 = vadd.f32 %v1344_v8, %v1152_v7  ;;  %v1154_v10 = vpop.f32.mrb[9].mxu1  ;;  %v1346_v11 = vpop.f32.mrb[9].mxu0 }
 0x1cc   :  { %v1155_v12 = vpop.f32.mrb[10].mxu1  ;;  %v1347_v13 = vpop.f32.mrb[10].mxu0 }
 0x1cd   :  { %v1660_v14 = vadd.f32 %v1347_v13, %v1155_v12  ;;  %v1157_v15 = vpop.f32.mrb[11].mxu1  ;;  %v1349_v16 = vpop.f32.mrb[11].mxu0 }
 0x1d2   :  { %v1160_v17 = vpop.f32.mrb[20].mxu1  ;;  %v1352_v18 = vpop.f32.mrb[20].mxu0 }
 0x1d3   :  { %v1161_v19 = vadd.f32 %v1160_v17, %v1097_v44  ;;  %v1162_v20 = vpop.f32.mrb[21].mxu1  ;;  %v1354_v21 = vpop.f32.mrb[21].mxu0 }
 0x1d4   :  { %v1163_v22 = vpop.f32.mrb[22].mxu1  ;;  %v1355_v23 = vpop.f32.mrb[22].mxu0 }
 0x1d5   :  { %v1225_v24 = vadd.f32 %v1224_v35, %v1161_v19  ;;  %v1164_v25 = vpop.f32.mrb[23].mxu1  ;;  %v1356_v26 = vpop.f32.mrb[23].mxu0 }
 0x1d7   :  { %v1289_v27 = vadd.f32 %v1288_v43, %v1225_v24 }
 0x1d9   :  { %v1353_v28 = vadd.f32 %v1352_v18, %v1289_v27 }
 0x1fa   :  { %v1633_v29 = vpop.f32.mrb[24].mxu0  ;;  %v1637_v30 = vpop.f32.mrb[24].mxu1 }
 0x1fb   :  { %v1401_v31 = vadd.f32 %v1657_v63, %v1633_v29  ;;  %v1417_v32 = vadd.f32 %v1637_v30, %v1353_v28  ;;  %v1392_v33 = vpop.f32.mrb[25].mxu0  ;;  %v1408_v34 = vpop.f32.mrb[25].mxu1 }
 0x1fc   :  { %v1393_v36 = vadd.f32 %v1655_v53, %v1392_v33  ;;  %v1409_v37 = vadd.f32 %v1659_v9, %v1408_v34  ;;  %v1634_v38 = vpop.f32.mrb[26].mxu0  ;;  %v1638_v39 = vpop.f32.mrb[26].mxu1 }
 0x1fd   :  { %1424 = vst [vmem:[#allocation7 + $0x10] sm:$0xff] %v1401_v31  ;;  %1428 = vst [vmem:[#allocation7 + $0x30] sm:$0x1] %v1417_v32  ;;  %v1404_v40 = vadd.f32 %v1658_v4, %v1634_v38  ;;  %v1395_v35 = vpop.f32.mrb[27].mxu0  ;;  %v1411_v41 = vpop.f32.mrb[27].mxu1 }
 0x1fe   :  { %1422 = vst [vmem:[#allocation7] sm:$0xff] %v1393_v36  ;;  %1426 = vst [vmem:[#allocation7 + $0x20] sm:$0xff] %v1409_v37  ;;  %v1396_v42 = vadd.f32 %v1656_v58, %v1395_v35  ;;  %v1412_v43 = vadd.f32 %v1660_v14, %v1411_v41 }
 0x1ff   :  { %1425 = vst [vmem:[#allocation7 + $0x18] sm:$0xff] %v1404_v40 }
 0x200   :  { %1423 = vst [vmem:[#allocation7 + $0x8] sm:$0xff] %v1396_v42  ;;  %1427 = vst [vmem:[#allocation7 + $0x28] sm:$0xff] %v1412_v43 }
 0x201   :  { %1993 = shalt.err (!%p1990_p6)
}
 0x202   :  { %s1994_s10 = scalar_lea.hbm %s2070_s2, 896 }
 0x203   :  { %p1995_p7 = scmp.ne.s32.totalorder %s2070_s2, %s1994_s10  ;;  %p1998_p8 = scmp.lt.u32.totalorder %s1994_s10, %s2070_s2 }
 0x205   :  { %p2000_p9 = pnand %p1998_p8, %p1995_p7 }
 0x207   :  { %2003 = shalt.err (!%p2000_p9)
}
 0x208   :  { %s2015_s15 = smov 128   ;;  %s2016_s16 = smov 8  }
 0x209   :  { %1440 = dma.vmem_to_hbm [thread:$0]  %s1435_s6, 896, %s2070_s2, [#allocation4], %s2015_s15, %s2015_s15, %s2016_s16  }
 0x20a   :  { %2008 = dma.done.wait [#allocation4], 896  }
 0x20b   :  { %2009 = vsyncadd [#allocation4], 4294966400 }
 0x20c   :  { %1444 = vsyncpa [#allocation3], 1 }
 0x20d   :  { %1445 = vsyncpa [#allocation6], 1 }
 0x20e   :  { %1446 = vsyncpa [#allocation4], 1 }

</bundles_post_ra>
